<compile_context>
chip_gen: v6e
topology: v6e:2x2x1
jax: 0.10.0
libtpu: 0.0.40
codegen_flags: <defaults>
</compile_context>

<pallas_src>
import functools

import jax
import jax.numpy as jnp
from jax import lax
from jax.experimental import pallas as pl
from jax.experimental.pallas import tpu as pltpu


def _complex_conv1d_kernel(x_ref, w_ref, b_ref, y_ref, *, nb, k_taps):
    # x_ref: (1, 2*Cin, Lpad*Nb)   lane index = m*Nb + n   (n = in-group batch)
    # w_ref: (2*Cout, 2*Cin*K)     column index r = k*(2*Cin) + c
    # b_ref: (2*Cout, 1)           y_ref: (1, 2*Cout, Lout*Nb)
    x2 = x_ref[0]                      # (2*Cin, Lpad*Nb)
    n_out = y_ref.shape[-1]            # Lout*Nb

    # Implicit im2col: tap k is the static lane slice [k*Nb, k*Nb + Lout*Nb).
    # Concat row order (k-major, channel-minor) matches the wrapper's weight
    # packing r = k*(2*Cin) + c.
    rhs = jnp.concatenate(
        [x2[:, k * nb: k * nb + n_out] for k in range(k_taps)], axis=0
    )                                  # (2*Cin*K, Lout*Nb)

    # Single block-complex contraction on the MXU, f32 accumulation, then the
    # f32 bias add (broadcast over lanes) and a cast at the store.
    y = jnp.dot(w_ref[...], rhs, preferred_element_type=jnp.float32)
    y = y + b_ref[...]
    y_ref[0] = y.astype(y_ref.dtype)


def _divisors(n):
    ds = set()
    i = 1
    while i * i <= n:
        if n % i == 0:
            ds.add(i)
            ds.add(n // i)
        i += 1
    return ds


def _pick_batch_block(n, *, c2in, c2out, k, lpad, lout, itemsize,
                      budget_bytes=12 << 20):
    """Largest divisor of n whose per-step VMEM working set fits the budget.

    Prefers multiples of 128 so the per-tap lane shifts (k*Nb) stay
    tile-aligned (no XLU lane rotate when building the im2col RHS).
    """
    per_b = itemsize * (2 * c2in * lpad       # x block (double buffered)
                        + k * c2in * lout     # im2col RHS temporary
                        + 2 * c2out * lout)   # y block (double buffered)
    cap = max(1, budget_bytes // max(per_b, 1))
    divs = [d for d in _divisors(n) if d <= cap]
    aligned = [d for d in divs if d % 128 == 0]
    return max(aligned) if aligned else max(divs)


def complex_conv1d(x, wr, wi, br=None, bi=None, *, stride=1, padding=0,
                   dilation=1, groups=1, batch_block=None):
    """x: (N, 2*Cin, L); wr/wi: (Cout, Cin, K); br/bi: (Cout,) or None."""
    # TODO(synk): stride/dilation/groups != 1 not implemented in the kernel
    # (module defaults are 1).
    assert stride == 1 and dilation == 1 and groups == 1

    N, c2, _ = x.shape
    cin = c2 // 2
    cout, _, K = wr.shape

    if padding:
        # TODO(synk): handle the padding halo inside the kernel to avoid this
        # extra HBM pass over x (module default padding=0 never hits it).
        x = jnp.pad(x, ((0, 0), (0, 0), (padding, padding)))
    lpad = x.shape[2]
    lout = lpad - K + 1

    # Pack the block-complex weight once (outside the hot loop):
    #   [[Wr, -Wi], [Wi, Wr]] with taps folded into the contraction axis,
    # column order r = k*(2*Cin) + c to match the in-kernel im2col concat.
    w_top = jnp.concatenate([wr, -wi], axis=1)           # (Cout, 2*Cin, K)
    w_bot = jnp.concatenate([wi, wr], axis=1)            # (Cout, 2*Cin, K)
    w_full = jnp.concatenate([w_top, w_bot], axis=0)     # (2*Cout, 2*Cin, K)
    w_blk = jnp.transpose(w_full, (0, 2, 1)).reshape(2 * cout, K * 2 * cin)
    w_blk = w_blk.astype(x.dtype)

    if br is None:
        br = jnp.zeros((cout,), jnp.float32)
    if bi is None:
        bi = jnp.zeros((cout,), jnp.float32)
    b_blk = jnp.concatenate([br, bi]).reshape(2 * cout, 1).astype(jnp.float32)

    nb = (batch_block if batch_block is not None
          else _pick_batch_block(N, c2in=c2, c2out=2 * cout, k=K, lpad=lpad,
                                 lout=lout, itemsize=x.dtype.itemsize))
    assert N % nb == 0, (N, nb)
    g = N // nb

    # Lane-dense, batch-folded layout: x_g[gi, c, m*nb + n] = x[gi*nb+n, c, m].
    # TODO(synk): tile the length axis (with a (K-1)*nb lane halo) for
    # audio-scale L; currently one batch group's full padded length must fit
    # in a single VMEM block.
    x_g = x.reshape(g, nb, c2, lpad)
    x_g = jnp.transpose(x_g, (0, 2, 3, 1)).reshape(g, c2, lpad * nb)

    kernel = functools.partial(_complex_conv1d_kernel, nb=nb, k_taps=K)

    y_g = pl.pallas_call(
        kernel,
        out_shape=jax.ShapeDtypeStruct((g, 2 * cout, lout * nb), x.dtype),
        grid=(g,),
        in_specs=[
            pl.BlockSpec((1, c2, lpad * nb), lambda i: (i, 0, 0)),
            pl.BlockSpec((2 * cout, K * c2), lambda i: (0, 0)),
            pl.BlockSpec((2 * cout, 1), lambda i: (0, 0)),
        ],
        out_specs=pl.BlockSpec((1, 2 * cout, lout * nb), lambda i: (i, 0, 0)),
        compiler_params=pltpu.CompilerParams(
            dimension_semantics=("parallel",),
            vmem_limit_bytes=32 * 1024 * 1024),
    )(x_g, w_blk, b_blk)

    # Restore the module's (N, 2*Cout, Lout) layout (pure layout plumbing).
    y = y_g.reshape(g, 2 * cout, lout, nb)
    y = jnp.transpose(y, (0, 3, 1, 2)).reshape(N, 2 * cout, lout)
    return y


def _ref_forward(x, wr, wi, br, bi):
    """Pure-JAX reference mirroring the PyTorch forward."""
    cin = x.shape[1] // 2
    xr, xi = x[:, :cin], x[:, cin:]
    dn = ("NCH", "OIH", "NCH")

    def conv(a, w, b):
        y = lax.conv_general_dilated(a, w, (1,), "VALID",
                                     dimension_numbers=dn)
        if b is not None:
            y = y + b[None, :, None]
        return y

    yrr = conv(xr, wr, br)
    yri = conv(xr, wi, bi)
    yir = conv(xi, wr, None)
    yii = conv(xi, wi, None)
    return jnp.concatenate([yrr - yii, yri + yir], axis=1)


if __name__ == "__main__":
    # Module config: in_channels=4, out_channels=4, kernel_size=3,
    # stride=1, padding=0, dilation=1, groups=1, bias=True.
    N, Cin, Cout, K, L = 2, 4, 4, 3, 16

    key = jax.random.PRNGKey(0)
    k_x, k_wr, k_wi = jax.random.split(key, 3)

    x = jax.random.normal(k_x, (N, 2 * Cin, L), jnp.float32)

    # kaiming_normal_(mode='fan_out', nonlinearity='relu') for conv1d:
    # fan_out = out_channels * kernel_size, std = sqrt(2 / fan_out).
    std = (2.0 / (Cout * K)) ** 0.5
    wr = std * jax.random.normal(k_wr, (Cout, Cin, K), jnp.float32)
    wi = std * jax.random.normal(k_wi, (Cout, Cin, K), jnp.float32)
    # Module zeros the biases in reset_parameters.
    br = jnp.zeros((Cout,), jnp.float32)
    bi = jnp.zeros((Cout,), jnp.float32)

    y = complex_conv1d(x, wr, wi, br, bi)
    y = jax.block_until_ready(y)

    y_ref = _ref_forward(x, wr, wi, br, bi)
    assert y.shape == (N, 2 * Cout, L - K + 1), y.shape
    assert jnp.allclose(y, y_ref, atol=1e-5, rtol=1e-5), \
        float(jnp.max(jnp.abs(y - y_ref)))

    print("KERNEL_OK")
</pallas_src>

<mosaic_0001>
module attributes {stable_mosaic.version = 11 : i64} {
  func.func @_complex_conv1d_kernel(%arg0: i32, %arg1: memref<1x8x32xf32, #tpu.memory_space<vmem>>, %arg2: memref<8x24xf32, #tpu.memory_space<vmem>>, %arg3: memref<8x1xf32, #tpu.memory_space<vmem>>, %arg4: memref<1x8x28xf32, #tpu.memory_space<vmem>>) attributes {dimension_semantics = [#tpu.dimension_semantics<parallel>], iteration_bounds = array<i64: 1>, scalar_prefetch = 0 : i64, scratch_operands = 0 : i64, tpu.core_type = #tpu.core_type<tc>, window_params = [{transform_indices = @transform_0, window_bounds = array<i64: 1, 8, 32>}, {pipeline_mode = #tpu.pipeline_mode<synchronous>, transform_indices = @transform_1, window_bounds = array<i64: 8, 24>}, {pipeline_mode = #tpu.pipeline_mode<synchronous>, transform_indices = @transform_2, window_bounds = array<i64: 8, 1>}, {transform_indices = @transform_3, window_bounds = array<i64: 1, 8, 28>}]} {
    %c0 = arith.constant 0 : index
    %c0_0 = arith.constant 0 : index
    %c0_1 = arith.constant 0 : index
    %0 = vector.load %arg1[%c0, %c0_0, %c0_1] : memref<1x8x32xf32, #tpu.memory_space<vmem>>, vector<1x8x32xf32>
    %1 = vector.shape_cast %0 : vector<1x8x32xf32> to vector<8x32xf32>
    %2 = vector.extract_strided_slice %1 {offsets = [0, 0], sizes = [8, 28], strides = [1, 1]} : vector<8x32xf32> to vector<8x28xf32>
    %3 = vector.extract_strided_slice %1 {offsets = [0, 2], sizes = [8, 28], strides = [1, 1]} : vector<8x32xf32> to vector<8x28xf32>
    %4 = vector.extract_strided_slice %1 {offsets = [0, 4], sizes = [8, 28], strides = [1, 1]} : vector<8x32xf32> to vector<8x28xf32>
    %5 = tpu.concatenate %2, %3, %4 in 0 : vector<8x28xf32>, vector<8x28xf32>, vector<8x28xf32> -> vector<24x28xf32>
    %c0_2 = arith.constant 0 : index
    %c0_3 = arith.constant 0 : index
    %6 = vector.load %arg2[%c0_2, %c0_3] : memref<8x24xf32, #tpu.memory_space<vmem>>, vector<8x24xf32>
    %cst = arith.constant dense<0.000000e+00> : vector<8x28xf32>
    %7 = tpu.matmul %6, %5, %cst {dimension_numbers = #tpu.dot_dimension_numbers<[1], [0], [0], [1], [0, 0, 1, 1], [], []>} : vector<8x24xf32>, vector<24x28xf32>, vector<8x28xf32> -> vector<8x28xf32>
    %c0_4 = arith.constant 0 : index
    %c0_5 = arith.constant 0 : index
    %8 = vector.load %arg3[%c0_4, %c0_5] : memref<8x1xf32, #tpu.memory_space<vmem>>, vector<8x1xf32>
    %9 = vector.broadcast %8 : vector<8x1xf32> to vector<8x28xf32>
    %10 = arith.addf %7, %9 : vector<8x28xf32>
    %c0_6 = arith.constant 0 : index
    %c0_7 = arith.constant 0 : index
    %c0_8 = arith.constant 0 : index
    %11 = vector.load %arg4[%c0_6, %c0_7, %c0_8] : memref<1x8x28xf32, #tpu.memory_space<vmem>>, vector<1x8x28xf32>
    %12 = vector.shape_cast %11 : vector<1x8x28xf32> to vector<8x28xf32>
    %13 = vector.shape_cast %10 : vector<8x28xf32> to vector<1x8x28xf32>
    tpu.vector_store %arg4[%c0_6, %c0_7, %c0_8], %13 {strides = array<i32>} : memref<1x8x28xf32, #tpu.memory_space<vmem>>, vector<1x8x28xf32>,
    return
  }
  func.func @transform_0(%arg0: i32) -> (i32, i32, i32) {
    %c0_i32 = arith.constant 0 : i32
    %c0_i32_0 = arith.constant 0 : i32
    %c0_i32_1 = arith.constant 0 : i32
    return %arg0, %c0_i32, %c0_i32_0 : i32, i32, i32
  }
  func.func @transform_1(%arg0: i32) -> (i32, i32) {
    %c0_i32 = arith.constant 0 : i32
    %c0_i32_0 = arith.constant 0 : i32
    %c0_i32_1 = arith.constant 0 : i32
    return %c0_i32, %c0_i32_0 : i32, i32
  }
  func.func @transform_2(%arg0: i32) -> (i32, i32) {
    %c0_i32 = arith.constant 0 : i32
    %c0_i32_0 = arith.constant 0 : i32
    %c0_i32_1 = arith.constant 0 : i32
    return %c0_i32, %c0_i32_0 : i32, i32
  }
  func.func @transform_3(%arg0: i32) -> (i32, i32, i32) {
    %c0_i32 = arith.constant 0 : i32
    %c0_i32_0 = arith.constant 0 : i32
    %c0_i32_1 = arith.constant 0 : i32
    return %arg0, %c0_i32, %c0_i32_0 : i32, i32, i32
  }
}

</mosaic_0001>

<bundles_post_ra>
// kernel: tpu_custom_call.1
= control target key start
LH: loop header
LB: loop body
LE: loop exit
PB: predicated region body
PF: predicated region fallthrough
CT: control target
= control target key end

     0   :  { %8 = vsyncpa [#allocation3], 0  ;;  %s239_s0 = inlined_call_operand.vmem [shape: f32[1,8,32], index: 0, kind: input, shape index: {}]   ;;  %s240_s1 = inlined_call_operand.hbm [shape: f32[8,24], index: 1, kind: input, shape index: {}]   ;;  %s241_s2 = inlined_call_operand.vmem [shape: f32[8,1], index: 2, kind: input, shape index: {}]   ;;  %s242_s3 = inlined_call_operand.hbm [shape: f32[1,8,28], index: 3, kind: output, shape index: {}]  }
   0x1   :  { %9 = vsyncpa [#allocation4], 0  ;;  %s200_s12 = smov [#allocation2]  }
   0x2   :  { %s18_s13 = sshll.u32 %s200_s12, 4  ;;  %s19_s13 = int_to_ptr.vmem [resolvable:$true] %s18_s13 }
   0x3   :  { %s164_s14 = scalar_lea.vmem %s19_s13, 128  ;;  %p169_p1 = scmp.lt.s32.totalorder %s19_s13, %s19_s13 }
   0x4   :  { %p165_p0 = scmp.ne.s32.totalorder %s19_s13, %s164_s14  ;;  %p170_p2 = scmp.lt.s32.totalorder %s164_s14, %s164_s14 }
   0x6   :  { %p171_p3 = por %p170_p2, %p169_p1 }
   0x8   :  { %p172_p4 = pnand %p171_p3, %p165_p0 }
   0xa   :  { %175 = shalt.err (!%p172_p4)
}
   0xb   :  { %21 = dma.hbm_to_vmem [thread:$0]  %s240_s1, 128, %s19_s13, [#allocation3]  }
   0xc   :  { %196 = dma.done.wait [#allocation3], 128  }
   0xd   :  { %197 = vsyncadd [#allocation3], 4294967168  ;;  %v201_v0 = vmov 0.0   ;;  %vm202_vm0 = vmmov 0   ;;  %v203_v1 = vmov 0   ;;  %v27_v2 = vld [vmem:[%s239_s0] sm:$0xff] }
   0xe   :  { %138 = vmatprep.subr.mxu0 %v201_v0  ;;  %144 = vmatprep.mubr.msk.f32.mxu0 %vm202_vm0, %v201_v0  ;;  %v36_v3 = vld [vmem:[%s241_s2] sm:$0xff]  ;;  %s204_s21 = smov 124   ;;  %s205_s1 = smov 126   ;;  %vm42_vm1 = vcmask 195584   ;;  %vm116_vm2 = vcmask 228352  }
   0xf   :  { %154 = vset.pattern.permute.xlu1 %v203_v1  ;;  %155 = vset.pattern.permute.xlu0 %v203_v1  ;;  %v35_v6 = vld [vmem:[#allocation2] sm:$0xff]  ;;  %s206_s0 = smov [#allocation5]  }
  0x10   :  { %32 = vrot.lane.b32.xlu0 %v27_v2, %s204_s21  ;;  %39 = vperm.xlu1 %154, %v36_v3   ;;  %s124_s22 = sshll.u32 %s206_s0, 4  ;;  %s125_s22 = int_to_ptr.vmem [resolvable:$true] %s124_s22 }
  0x11   :  { %s176_s2 = scalar_lea.vmem %s125_s22, 128  ;;  %p181_p6 = scmp.lt.s32.totalorder %s125_s22, %s125_s22 }
  0x12   :  { %p177_p5 = scmp.ne.s32.totalorder %s125_s22, %s176_s2  ;;  %p182_p7 = scmp.lt.s32.totalorder %s176_s2, %s176_s2 }
  0x14   :  { %29 = vrot.lane.b32.xlu0 %v27_v2, %s205_s1  ;;  %p183_p8 = por %p182_p7, %p181_p6 }
  0x16   :  { %p184_p9 = pnand %p183_p8, %p177_p5 }
  0x82   :  { %v33_v4 = vpop.permute.xlu0 %32 }
  0x83   :  { %139 = vmatpush3.msra.mxu0 %v33_v4 }
  0x84   :  { %140 = vmatprep.subr.mxu0 %v201_v0 }
  0x86   :  { %v30_v5 = vpop.permute.xlu0 %29 }
  0x87   :  { %141 = vmatpush3.msra.mxu0 %v30_v5 }
  0x88   :  { %142 = vmatprep.subr.mxu0 %v201_v0 }
  0x89   :  { %143 = vmatpush3.msra.mxu0 %v27_v2 }
  0x8a   :  { %145 = vmatmul.mubr.msk.f32.vlgmr.msra.gmra.mxu0 %vm42_vm1, %v35_v6 }
  0x8b   :  { %v40_v7 = vpop.permute.xlu1 %39 }
 0x14a   :  { %v112_v8 = vpop.f32.mrf.mxu0 }
 0x14b   :  { %v113_v9 = vadd.f32 %v112_v8, %v40_v7 }
 0x14c   :  { %v146_v10 = vpop.f32.mrf.mxu0 }
 0x14d   :  { %117 = vst.msk [vmem:[#allocation5] sm:$0xff] %vm116_vm2, %v113_v9 }
 0x14e   :  { %187 = shalt.err (!%p184_p9)
}
 0x14f   :  { %127 = dma.vmem_to_hbm [thread:$0]  %s125_s22, 128, %s242_s3, [#allocation4]  }
 0x150   :  { %198 = dma.done.wait [#allocation4], 128  }
 0x151   :  { %199 = vsyncadd [#allocation4], 4294967168 }
 0x152   :  { %131 = vsyncpa [#allocation3], 1 }
 0x153   :  { %132 = vsyncpa [#allocation4], 1 }

</bundles_post_ra>
